<compile_context>
chip_gen: v7x
topology: tpu7x:2x2x1
jax: 0.10.0
libtpu: 0.0.40
codegen_flags: <defaults>
</compile_context>

<pallas_src>
import functools

import jax
import jax.numpy as jnp
from jax.experimental import pallas as pl
from jax.experimental.pallas import tpu as pltpu


def _self_attention_kernel(x_ref, wqkv_ref, wo_ref, bo_ref, o_ref,
                           *, heads, e, bt, t, d):
    """One batch slab: x block is (bt*t, d); all heads processed together."""
    dh = heads * e
    rows = bt * t

    x2 = x_ref[...]                      # (rows, d), native dtype (f32 / bf16)
    cd = x2.dtype                        # uniform MXU operand dtype
    scale = e ** -0.5

    # --- Fused Q/K/V projection: one wide MXU matmul, f32 accumulation. ---
    qkv = jnp.dot(x2, wqkv_ref[...],
                  preferred_element_type=jnp.float32)        # (rows, 3*dh)

    q2 = qkv[:, 0 * dh:1 * dh] * scale   # fold 1/sqrt(e) into q (O(rows*dh))
    k2 = qkv[:, 1 * dh:2 * dh]
    v2 = qkv[:, 2 * dh:3 * dh]

    def split_heads(y):                  # (rows, dh) f32 -> (heads*bt, t, e)
        parts = [y[:, h * e:(h + 1) * e] for h in range(heads)]
        yh = jnp.stack(parts, axis=0)    # (heads, rows, e): leading-axis concat
        return yh.reshape(heads * bt, t, e).astype(cd)

    qh, kh, vh = split_heads(q2), split_heads(k2), split_heads(v2)

    # --- Attention core, batched over (head, batch) in one einsum pair. ---
    s = jnp.einsum('bqe,bke->bqk', qh, kh,
                   preferred_element_type=jnp.float32)       # (heads*bt, t, t)
    s = s - jnp.max(s, axis=-1, keepdims=True)
    p = jnp.exp(s)
    p = p / jnp.sum(p, axis=-1, keepdims=True)               # exact softmax
    ctx = jnp.einsum('bqk,bke->bqe', p.astype(cd), vh,
                     preferred_element_type=jnp.float32)     # (heads*bt, t, e)

    # --- Merge heads, then ONE output projection with K = dh. ---
    ctx3 = ctx.reshape(heads, rows, e)
    ctx2 = jnp.concatenate([ctx3[h] for h in range(heads)], axis=-1)  # (rows, dh)
    out = jnp.dot(ctx2.astype(cd), wo_ref[...],
                  preferred_element_type=jnp.float32)        # (rows, d)
    out = out + bo_ref[...]                                  # (1, d) f32 bias
    o_ref[...] = out.astype(o_ref.dtype)


def _round_up(x, m):
    return -(-x // m) * m


def _padded_bytes(shape, itemsize):
    """Bytes of a VMEM-resident array with (8, 128) vreg-tile padding."""
    lead = 1
    for s in shape[:-2]:
        lead *= s
    sub = _round_up(shape[-2], 8) if len(shape) >= 2 else 1
    lane = _round_up(shape[-1], 128)
    return lead * sub * lane * itemsize


def _vmem_estimate(bt, t, d, e, heads, itemsize):
    """Padding-aware per-grid-step VMEM working-set estimate."""
    dh = heads * e
    rows = bt * t
    hb = heads * bt
    est = 0
    est += 2 * 2 * _padded_bytes((rows, d), itemsize)          # x + out, double-buffered
    est += 2 * (_padded_bytes((d, 3 * dh), itemsize)
                + _padded_bytes((dh, d), itemsize)
                + _padded_bytes((1, d), 4))                    # weights + bias
    est += _padded_bytes((rows, 3 * dh), 4)                    # fused qkv (f32)
    est += 3 * _padded_bytes((rows, dh), 4)                    # q/k/v column slices
    est += 3 * _padded_bytes((hb, t, e), 4)                    # head-batched q/k/v
    est += 2 * _padded_bytes((hb, t, t), 4)                    # logits + probs (f32)
    est += _padded_bytes((hb, t, e), 4)                        # ctx
    est += _padded_bytes((rows, dh), 4)                        # merged ctx
    est += _padded_bytes((rows, d), 4)                         # f32 out
    return est


def _vmem_budget_and_limit():
    """(per-step working-set budget, scoped-vmem limit) from the local chip."""
    cap = 64 * 1024 * 1024               # v7x per-core VMEM: smallest of v5e/v6e/v7x
    try:
        cap = int(getattr(pltpu.get_tpu_info(), "vmem_capacity_bytes", cap))
    except Exception:
        pass                             # keep the conservative default
    budget = cap // 4                    # headroom for compiler scratch / spills
    limit = min(cap * 3 // 4, 100 * 1024 * 1024)
    return budget, limit


def _pick_batch_tile(b, t, d, e, heads, itemsize, vmem_budget):
    """Batch elements per grid step."""
    # ~1024 projection rows per step: several full 256-row MXU passes
    # (v6e/v7x; 128 already saturates v5e) and enough bytes per DMA to
    # amortize the ~0.35us per-grid-step overhead.
    target_rows = 1024
    bt = min(b, max(1, -(-target_rows // t)))
    # v7x has 2 TensorCores per chip: keep >=2 steps on the ("parallel",)
    # grid so both get work; costs only one extra cheap step on 1-TC v5e/v6e.
    if b >= 2:
        bt = min(bt, b // 2)
    bt = max(bt, 1)
    while b % bt:
        bt -= 1
    # Shrink until the padding-aware estimate fits the VMEM budget.
    while bt > 1 and _vmem_estimate(bt, t, d, e, heads, itemsize) > vmem_budget:
        bt -= 1
        while b % bt:
            bt -= 1
    return bt


def self_attention(x, wq, wkv, wo, bo, *, heads, dim_heads):
    """x: (B, T, D); weights in (in, out) layout.  Returns (B, T, D)."""
    b, t, d = x.shape
    e = dim_heads
    dh = heads * e
    assert wq.shape == (d, dh)
    assert wkv.shape == (d, 2 * dh)
    assert wo.shape == (dh, d)
    assert bo.shape == (1, d)

    # Fused, lane-dense 2-D weights; uniform compute dtype (bf16 weights when
    # activations are bf16 keeps output-projection matmuls single-pass).
    wqkv = jnp.concatenate([wq, wkv], axis=1).astype(x.dtype)   # (d, 3*dh)
    wo_c = wo.astype(x.dtype)
    bo_c = bo.astype(jnp.float32)

    budget, vmem_limit = _vmem_budget_and_limit()
    bt = _pick_batch_tile(b, t, d, e, heads, x.dtype.itemsize, budget)

    # Row-slab I/O: (B*T, D) 2-D layout, one (bt*t, d) block per grid step.
    x2 = x.reshape(b * t, d)

    kernel = functools.partial(_self_attention_kernel,
                               heads=heads, e=e, bt=bt, t=t, d=d)

    out2 = pl.pallas_call(
        kernel,
        out_shape=jax.ShapeDtypeStruct((b * t, d), x.dtype),
        grid=(b // bt,),
        in_specs=[
            pl.BlockSpec((bt * t, d), lambda i: (i, 0)),     # x row slab
            pl.BlockSpec((d, 3 * dh), lambda i: (0, 0)),     # fused W_qkv
            pl.BlockSpec((dh, d), lambda i: (0, 0)),         # W_out
            pl.BlockSpec((1, d), lambda i: (0, 0)),          # b_out
        ],
        out_specs=pl.BlockSpec((bt * t, d), lambda i: (i, 0)),
        compiler_params=pltpu.CompilerParams(
            dimension_semantics=("parallel",),
            vmem_limit_bytes=vmem_limit),
    )(x2, wqkv, wo_c, bo_c)
    return out2.reshape(b, t, d)


def self_attention_ref(x, wq, wkv, wo, bo, *, heads, dim_heads):
    """Pure-JAX reference mirroring the PyTorch module semantics."""
    b, t, d = x.shape
    e = dim_heads
    dh = heads * e
    q = x @ wq
    kvp = x @ wkv
    k, v = kvp[..., :dh], kvp[..., dh:]

    def merge_heads(y):
        return y.reshape(b, t, heads, e).transpose(0, 2, 1, 3).reshape(b * heads, t, e)

    q, k, v = map(merge_heads, (q, k, v))
    dots = jnp.einsum('bie,bje->bij', q, k) * e ** (-0.5)
    dots = jax.nn.softmax(dots, axis=-1)
    out = jnp.einsum('bij,bje->bie', dots, v)
    out = out.reshape(b, heads, t, e).transpose(0, 2, 1, 3).reshape(b, t, dh)
    return out @ wo + bo[0]


if __name__ == "__main__":
    # Module config: dim=32, heads=4 -> dim_heads = 8, dim_hidden = 32
    B, T, DIM, HEADS = 2, 8, 32, 4
    DIM_HEADS = DIM // HEADS
    DIM_HIDDEN = DIM_HEADS * HEADS

    key = jax.random.PRNGKey(0)
    kx, kq, kkv, kwo, kbo = jax.random.split(key, 5)

    x = jax.random.normal(kx, (B, T, DIM), dtype=jnp.float32)

    # Deterministic synthetic parameters (Linear weights in (in, out) layout).
    wq = jax.random.normal(kq, (DIM, DIM_HIDDEN), dtype=jnp.float32) * 0.1
    wkv = jax.random.normal(kkv, (DIM, 2 * DIM_HIDDEN), dtype=jnp.float32) * 0.1
    wo = jax.random.normal(kwo, (DIM_HIDDEN, DIM), dtype=jnp.float32) * 0.1
    bo = jax.random.normal(kbo, (1, DIM), dtype=jnp.float32) * 0.1

    out = self_attention(x, wq, wkv, wo, bo, heads=HEADS, dim_heads=DIM_HEADS)
    out = jax.block_until_ready(out)

    ref = self_attention_ref(x, wq, wkv, wo, bo, heads=HEADS, dim_heads=DIM_HEADS)
    assert out.shape == (B, T, DIM)
    # Softmax is now exact in-kernel; tolerance covers MXU-pass precision
    # differences vs. the default-precision pure-JAX reference matmuls.
    assert jnp.allclose(out, ref, atol=5e-3, rtol=5e-3), "mismatch vs reference"

    print("KERNEL_OK")
</pallas_src>

<mosaic_0001>
module attributes {stable_mosaic.version = 11 : i64} {
  func.func @_self_attention_kernel(%arg0: i32, %arg1: memref<8x32xf32, #tpu.memory_space<vmem>>, %arg2: memref<32x96xf32, #tpu.memory_space<vmem>>, %arg3: memref<32x32xf32, #tpu.memory_space<vmem>>, %arg4: memref<1x32xf32, #tpu.memory_space<vmem>>, %arg5: memref<8x32xf32, #tpu.memory_space<vmem>>) attributes {dimension_semantics = [#tpu.dimension_semantics<parallel>], iteration_bounds = array<i64: 2>, scalar_prefetch = 0 : i64, scratch_operands = 0 : i64, tpu.core_type = #tpu.core_type<tc>, window_params = [{transform_indices = @transform_0, window_bounds = array<i64: 8, 32>}, {pipeline_mode = #tpu.pipeline_mode<synchronous>, transform_indices = @transform_1, window_bounds = array<i64: 32, 96>}, {pipeline_mode = #tpu.pipeline_mode<synchronous>, transform_indices = @transform_2, window_bounds = array<i64: 32, 32>}, {pipeline_mode = #tpu.pipeline_mode<synchronous>, transform_indices = @transform_3, window_bounds = array<i64: 1, 32>}, {transform_indices = @transform_4, window_bounds = array<i64: 8, 32>}]} {
    %c0 = arith.constant 0 : index
    %c0_0 = arith.constant 0 : index
    %0 = vector.load %arg1[%c0, %c0_0] : memref<8x32xf32, #tpu.memory_space<vmem>>, vector<8x32xf32>
    %c0_1 = arith.constant 0 : index
    %c0_2 = arith.constant 0 : index
    %1 = vector.load %arg2[%c0_1, %c0_2] : memref<32x96xf32, #tpu.memory_space<vmem>>, vector<32x96xf32>
    %cst = arith.constant dense<0.000000e+00> : vector<8x96xf32>
    %2 = tpu.matmul %0, %1, %cst {dimension_numbers = #tpu.dot_dimension_numbers<[1], [0], [0], [1], [0, 0, 1, 1], [], []>} : vector<8x32xf32>, vector<32x96xf32>, vector<8x96xf32> -> vector<8x96xf32>
    %3 = vector.extract_strided_slice %2 {offsets = [0, 0], sizes = [8, 32], strides = [1, 1]} : vector<8x96xf32> to vector<8x32xf32>
    %cst_3 = arith.constant 0.353553385 : f32
    %4 = vector.broadcast %cst_3 : f32 to vector<8x32xf32>
    %5 = arith.mulf %3, %4 : vector<8x32xf32>
    %6 = vector.extract_strided_slice %2 {offsets = [0, 32], sizes = [8, 32], strides = [1, 1]} : vector<8x96xf32> to vector<8x32xf32>
    %7 = vector.extract_strided_slice %2 {offsets = [0, 64], sizes = [8, 32], strides = [1, 1]} : vector<8x96xf32> to vector<8x32xf32>
    %8 = vector.extract_strided_slice %5 {offsets = [0, 0], sizes = [8, 8], strides = [1, 1]} : vector<8x32xf32> to vector<8x8xf32>
    %9 = vector.extract_strided_slice %5 {offsets = [0, 8], sizes = [8, 8], strides = [1, 1]} : vector<8x32xf32> to vector<8x8xf32>
    %10 = vector.extract_strided_slice %5 {offsets = [0, 16], sizes = [8, 8], strides = [1, 1]} : vector<8x32xf32> to vector<8x8xf32>
    %11 = vector.extract_strided_slice %5 {offsets = [0, 24], sizes = [8, 8], strides = [1, 1]} : vector<8x32xf32> to vector<8x8xf32>
    %12 = vector.shape_cast %8 : vector<8x8xf32> to vector<1x8x8xf32>
    %13 = vector.shape_cast %9 : vector<8x8xf32> to vector<1x8x8xf32>
    %14 = vector.shape_cast %10 : vector<8x8xf32> to vector<1x8x8xf32>
    %15 = vector.shape_cast %11 : vector<8x8xf32> to vector<1x8x8xf32>
    %16 = tpu.concatenate %12, %13, %14, %15 in 0 : vector<1x8x8xf32>, vector<1x8x8xf32>, vector<1x8x8xf32>, vector<1x8x8xf32> -> vector<4x8x8xf32>
    %17 = vector.extract_strided_slice %6 {offsets = [0, 0], sizes = [8, 8], strides = [1, 1]} : vector<8x32xf32> to vector<8x8xf32>
    %18 = vector.extract_strided_slice %6 {offsets = [0, 8], sizes = [8, 8], strides = [1, 1]} : vector<8x32xf32> to vector<8x8xf32>
    %19 = vector.extract_strided_slice %6 {offsets = [0, 16], sizes = [8, 8], strides = [1, 1]} : vector<8x32xf32> to vector<8x8xf32>
    %20 = vector.extract_strided_slice %6 {offsets = [0, 24], sizes = [8, 8], strides = [1, 1]} : vector<8x32xf32> to vector<8x8xf32>
    %21 = vector.shape_cast %17 : vector<8x8xf32> to vector<1x8x8xf32>
    %22 = vector.shape_cast %18 : vector<8x8xf32> to vector<1x8x8xf32>
    %23 = vector.shape_cast %19 : vector<8x8xf32> to vector<1x8x8xf32>
    %24 = vector.shape_cast %20 : vector<8x8xf32> to vector<1x8x8xf32>
    %25 = tpu.concatenate %21, %22, %23, %24 in 0 : vector<1x8x8xf32>, vector<1x8x8xf32>, vector<1x8x8xf32>, vector<1x8x8xf32> -> vector<4x8x8xf32>
    %26 = vector.extract_strided_slice %7 {offsets = [0, 0], sizes = [8, 8], strides = [1, 1]} : vector<8x32xf32> to vector<8x8xf32>
    %27 = vector.extract_strided_slice %7 {offsets = [0, 8], sizes = [8, 8], strides = [1, 1]} : vector<8x32xf32> to vector<8x8xf32>
    %28 = vector.extract_strided_slice %7 {offsets = [0, 16], sizes = [8, 8], strides = [1, 1]} : vector<8x32xf32> to vector<8x8xf32>
    %29 = vector.extract_strided_slice %7 {offsets = [0, 24], sizes = [8, 8], strides = [1, 1]} : vector<8x32xf32> to vector<8x8xf32>
    %30 = vector.shape_cast %26 : vector<8x8xf32> to vector<1x8x8xf32>
    %31 = vector.shape_cast %27 : vector<8x8xf32> to vector<1x8x8xf32>
    %32 = vector.shape_cast %28 : vector<8x8xf32> to vector<1x8x8xf32>
    %33 = vector.shape_cast %29 : vector<8x8xf32> to vector<1x8x8xf32>
    %34 = tpu.concatenate %30, %31, %32, %33 in 0 : vector<1x8x8xf32>, vector<1x8x8xf32>, vector<1x8x8xf32>, vector<1x8x8xf32> -> vector<4x8x8xf32>
    "tpu.trace_start"() <{level = 10 : i32, message = "bqe,bke->bqk"}> : () -> ()
    %cst_4 = arith.constant dense<0.000000e+00> : vector<4x8x8xf32>
    %35 = tpu.matmul %16, %25, %cst_4 {dimension_numbers = #tpu.dot_dimension_numbers<[2], [2], [1], [1], [0, 0, 0, 1, 1, 1], [0], [0]>} : vector<4x8x8xf32>, vector<4x8x8xf32>, vector<4x8x8xf32> -> vector<4x8x8xf32>
    "tpu.trace_stop"() : () -> ()
    %cst_5 = arith.constant dense<0xFF800000> : vector<4x8xf32>
    %36 = vector.multi_reduction <maximumf>, %35, %cst_5 [2] : vector<4x8x8xf32> to vector<4x8xf32>
    %37 = vector.shape_cast %36 : vector<4x8xf32> to vector<4x8x1xf32>
    %38 = vector.broadcast %37 : vector<4x8x1xf32> to vector<4x8x8xf32>
    %39 = arith.subf %35, %38 : vector<4x8x8xf32>
    %40 = math.exp %39 : vector<4x8x8xf32>
    %cst_6 = arith.constant dense<0.000000e+00> : vector<4x8xf32>
    %41 = vector.multi_reduction <add>, %40, %cst_6 [2] : vector<4x8x8xf32> to vector<4x8xf32>
    %42 = vector.shape_cast %41 : vector<4x8xf32> to vector<4x8x1xf32>
    %43 = vector.broadcast %42 : vector<4x8x1xf32> to vector<4x8x8xf32>
    %44 = arith.divf %40, %43 : vector<4x8x8xf32>
    "tpu.trace_start"() <{level = 10 : i32, message = "bqk,bke->bqe"}> : () -> ()
    %cst_7 = arith.constant dense<0.000000e+00> : vector<4x8x8xf32>
    %45 = tpu.matmul %44, %34, %cst_7 {dimension_numbers = #tpu.dot_dimension_numbers<[2], [1], [1], [2], [0, 0, 0, 1, 1, 2], [0], [0]>} : vector<4x8x8xf32>, vector<4x8x8xf32>, vector<4x8x8xf32> -> vector<4x8x8xf32>
    "tpu.trace_stop"() : () -> ()
    %46 = vector.extract_strided_slice %45 {offsets = [0, 0, 0], sizes = [1, 8, 8], strides = [1, 1, 1]} : vector<4x8x8xf32> to vector<1x8x8xf32>
    %47 = vector.shape_cast %46 : vector<1x8x8xf32> to vector<8x8xf32>
    %48 = vector.extract_strided_slice %45 {offsets = [1, 0, 0], sizes = [1, 8, 8], strides = [1, 1, 1]} : vector<4x8x8xf32> to vector<1x8x8xf32>
    %49 = vector.shape_cast %48 : vector<1x8x8xf32> to vector<8x8xf32>
    %50 = vector.extract_strided_slice %45 {offsets = [2, 0, 0], sizes = [1, 8, 8], strides = [1, 1, 1]} : vector<4x8x8xf32> to vector<1x8x8xf32>
    %51 = vector.shape_cast %50 : vector<1x8x8xf32> to vector<8x8xf32>
    %52 = vector.extract_strided_slice %45 {offsets = [3, 0, 0], sizes = [1, 8, 8], strides = [1, 1, 1]} : vector<4x8x8xf32> to vector<1x8x8xf32>
    %53 = vector.shape_cast %52 : vector<1x8x8xf32> to vector<8x8xf32>
    %54 = tpu.concatenate %47, %49, %51, %53 in 1 : vector<8x8xf32>, vector<8x8xf32>, vector<8x8xf32>, vector<8x8xf32> -> vector<8x32xf32>
    %c0_8 = arith.constant 0 : index
    %c0_9 = arith.constant 0 : index
    %55 = vector.load %arg3[%c0_8, %c0_9] : memref<32x32xf32, #tpu.memory_space<vmem>>, vector<32x32xf32>
    %cst_10 = arith.constant dense<0.000000e+00> : vector<8x32xf32>
    %56 = tpu.matmul %54, %55, %cst_10 {dimension_numbers = #tpu.dot_dimension_numbers<[1], [0], [0], [1], [0, 0, 1, 1], [], []>} : vector<8x32xf32>, vector<32x32xf32>, vector<8x32xf32> -> vector<8x32xf32>
    %c0_11 = arith.constant 0 : index
    %c0_12 = arith.constant 0 : index
    %57 = vector.load %arg4[%c0_11, %c0_12] : memref<1x32xf32, #tpu.memory_space<vmem>>, vector<1x32xf32>
    %58 = vector.broadcast %57 : vector<1x32xf32> to vector<8x32xf32>
    %59 = arith.addf %56, %58 : vector<8x32xf32>
    %c0_13 = arith.constant 0 : index
    %c0_14 = arith.constant 0 : index
    %60 = vector.load %arg5[%c0_13, %c0_14] : memref<8x32xf32, #tpu.memory_space<vmem>>, vector<8x32xf32>
    tpu.vector_store %arg5[%c0_13, %c0_14], %59 {strides = array<i32>} : memref<8x32xf32, #tpu.memory_space<vmem>>, vector<8x32xf32>,
    return
  }
  func.func @transform_0(%arg0: i32) -> (i32, i32) {
    %c0_i32 = arith.constant 0 : i32
    %c0_i32_0 = arith.constant 0 : i32
    return %arg0, %c0_i32 : i32, i32
  }
  func.func @transform_1(%arg0: i32) -> (i32, i32) {
    %c0_i32 = arith.constant 0 : i32
    %c0_i32_0 = arith.constant 0 : i32
    %c0_i32_1 = arith.constant 0 : i32
    return %c0_i32, %c0_i32_0 : i32, i32
  }
  func.func @transform_2(%arg0: i32) -> (i32, i32) {
    %c0_i32 = arith.constant 0 : i32
    %c0_i32_0 = arith.constant 0 : i32
    %c0_i32_1 = arith.constant 0 : i32
    return %c0_i32, %c0_i32_0 : i32, i32
  }
  func.func @transform_3(%arg0: i32) -> (i32, i32) {
    %c0_i32 = arith.constant 0 : i32
    %c0_i32_0 = arith.constant 0 : i32
    %c0_i32_1 = arith.constant 0 : i32
    return %c0_i32, %c0_i32_0 : i32, i32
  }
  func.func @transform_4(%arg0: i32) -> (i32, i32) {
    %c0_i32 = arith.constant 0 : i32
    %c0_i32_0 = arith.constant 0 : i32
    return %arg0, %c0_i32 : i32, i32
  }
}

</mosaic_0001>

<bundles_post_ra>
// kernel: tpu_custom_call.1
= control target key start
LH: loop header
LB: loop body
LE: loop exit
PB: predicated region body
PF: predicated region fallthrough
CT: control target
= control target key end

     0   :  { %9 = vsyncpa [#allocation3], 0  ;;  %s1929_s0 = inlined_call_operand.hbm [shape: f32[16,32], index: 0, kind: input, shape index: {}]   ;;  %s1930_s1 = inlined_call_operand.hbm [shape: f32[32,96], index: 1, kind: input, shape index: {}]   ;;  %s1931_s2 = inlined_call_operand.hbm [shape: f32[32,32], index: 2, kind: input, shape index: {}]   ;;  %s1932_s3 = inlined_call_operand.vmem [shape: f32[1,32], index: 3, kind: input, shape index: {}]   ;;  %s1933_s4 = inlined_call_operand.hbm [shape: f32[16,32], index: 4, kind: output, shape index: {}]  }
   0x1   :  { %11 = vsyncpa [#allocation3 + $0x1], 0 }
   0x2   :  { %12 = vsyncpa [#allocation6], 0 }
   0x3   :  { %13 = vsyncpa [#allocation4], 0 }
   0x4   :  { %15 = vsyncpa [#allocation4 + $0x1], 0  ;;  %s1621_s15 = smov 0   ;;  %s1623_s16 = smov 0  }
   0x5   :  { %s1625_s17 = smov 0   ;;  %s1627_s18 = smov 0  }
   0x6 LB: > { %s1642_s19 = sadd.s32 4294967295, %s1577_s18   ;;  %s1194_s20 = sadd.s32 4294967294, %s1577_s18   ;;  %s1577_s18 = sphi %s1627_s18, %s1953_s18   ;;  %s1573_s17 = sphi %s1625_s17, %s1952_s17   ;;  %s1569_s16 = sphi %s1623_s16, %s1951_s16   ;;  %s1565_s15 = sphi %s1621_s15, %s1950_s15  }
   0x7   : > { %p41_p0 = scmp.ne.s32.totalorder %s1569_s16, %s1565_s15  ;;  %p1934_p1 = scmp.eq.s32.totalorder %s1642_s19, 0 }
   0x8   : > { %p134_p3 = scmp.eq.s32.totalorder %s1194_s20, 1  ;;  %p1195_p5 = scmp.ge.s32.totalorder %s1577_s18, 1 }
   0x9   : > { %p1651_p4 = por %p1934_p1, %p41_p0  ;;  %p141_p7 = scmp.lt.s32.totalorder %s1577_s18, 3 }
   0xa   : > { %p1656_p6 = por %p134_p3, %p41_p0  ;;  %s1579_s24 = smov [#allocation5]  }
   0xb   : > { %s1937_s21 = scalar_select %p1651_p4, 1, 0 }
   0xc   : > { %s1938_s22 = scalar_select %p1656_p6, 1, 0 }
   0xd   : > { %p1661_p8 = pnand %p1195_p5, %p141_p7  ;;  %s153_s25 = sshll.u32 %s1579_s24, 4  ;;  %s1665_s25 = int_to_ptr.vmem [resolvable:$true] %s153_s25 }
   0xe   : > { %s1580_s27 = smov [#allocation7]   ;;  %s1421_s5 = scalar_lea.hbm %s1930_s1, 512 }
   0xf   : > { %p1337_p9 = pneg %p1661_p8  ;;  %s166_s28 = sshll.u32 %s1580_s27, 4  ;;  %s1676_s28 = int_to_ptr.vmem [resolvable:$true] %s166_s28 }
  0x10   : > { %p1422_p12 = scmp.ne.s32.totalorder %s1930_s1, %s1421_s5  ;;  %p1428_p5 = scmp.lt.u32.totalorder %s1421_s5, %s1930_s1 }
  0x11   : > { %p1672_p11 = pnand %p1337_p9, %p1934_p1 }
  0x13   : > { %p1423_p13 = pneg %p1672_p11 }
  0x15   : > { %p1424_p0 = pnand %p1423_p13, %p1422_p12 }
  0x17   : > { %p1425_p3 = pneg %p1424_p0 }
  0x19   : > { %p1430_p7 = pnand %p1428_p5, %p1425_p3 }
  0x1b   : > { %1433 = shalt.err (!%p1430_p7)
}
  0x1c   : > { %s1434_s10 = scalar_lea.vmem %s1665_s25, 512  ;;  %p1442_p2 = scmp.lt.s32.totalorder %s1665_s25, %s1665_s25 }
  0x1d   : > { %p1435_p9 = scmp.ne.s32.totalorder %s1665_s25, %s1434_s10  ;;  %p1443_p12 = scmp.lt.s32.totalorder %s1434_s10, %s1434_s10 }
  0x1f   : > { %p1437_p10 = pnand %p1435_p9, %p1423_p13  ;;  %p1444_p0 = por %p1443_p12, %p1442_p2 }
  0x21   : > { %p1438_p1 = pneg %p1437_p10 }
  0x23   : > { %p1445_p6 = pnand %p1444_p0, %p1438_p1 }
  0x25   : > { %1448 = shalt.err (!%p1445_p6)
}
  0x26   : > { %s1581_s11 = smov 128   ;;  %s1582_s12 = smov 8  }
  0x27   : > { %1340 = dma.hbm_to_vmem [thread:$0]  (!%p1672_p11), %s1930_s1, 512, %s1665_s25, [#allocation6], %s1581_s11, %s1581_s11, %s1582_s12  }
  0x28   : > { %s1449_s27 = scalar_lea.hbm %s1931_s2, 512 }
  0x29   : > { %p1450_p2 = scmp.ne.s32.totalorder %s1931_s2, %s1449_s27  ;;  %p1456_p10 = scmp.lt.u32.totalorder %s1449_s27, %s1931_s2 }
  0x2b   : > { %p1452_p1 = pnand %p1450_p2, %p1423_p13 }
  0x2d   : > { %p1453_p6 = pneg %p1452_p1 }
  0x2f   : > { %p1458_p3 = pnand %p1456_p10, %p1453_p6 }
  0x31   : > { %1461 = shalt.err (!%p1458_p3)
}
  0x32   : > { %s1462_s25 = scalar_lea.vmem %s1676_s28, 512  ;;  %p1470_p12 = scmp.lt.s32.totalorder %s1676_s28, %s1676_s28 }
  0x33   : > { %p1463_p5 = scmp.ne.s32.totalorder %s1676_s28, %s1462_s25  ;;  %p1471_p0 = scmp.lt.s32.totalorder %s1462_s25, %s1462_s25 }
  0x35   : > { %p1465_p7 = pnand %p1463_p5, %p1423_p13  ;;  %p1472_p2 = por %p1471_p0, %p1470_p12 }
  0x37   : > { %p1466_p9 = pneg %p1465_p7 }
  0x39   : > { %p1473_p1 = pnand %p1472_p2, %p1466_p9 }
  0x3b   : > { %1476 = shalt.err (!%p1473_p1)
}
  0x3c   : > { %1343 = dma.hbm_to_vmem [thread:$0]  (!%p1672_p11), %s1931_s2, 512, %s1676_s28, [#allocation6], %s1581_s11, %s1581_s11, %s1582_s12  }
  0x3d   : > { %s1731_s9 = sadd.s32 1, %s1577_s18   ;;  %s28_s26 = sadd.s32 1, %s1573_s17 }
  0x3e   : > { %s25_s10 = ssub.s32 %s1577_s18, %s1731_s9  ;;  %p35_p13 = scmp.ne.s32.totalorder %s1573_s17, %s1569_s16 }
  0x3f   : > { %p26_p6 = scmp.eq.s32.totalorder %s25_s10, 0  ;;  %p36_p10 = scmp.eq.s32.totalorder %s1577_s18, 0 }
  0x40   : > { %p1941_p3 = scmp.eq.s32.totalorder %s1642_s19, 1  ;;  %p1354_p7 = scmp.lt.s32.totalorder %s1577_s18, 2 }
  0x41   : > { %s1747_s14 = scalar_select %p26_p6, %s1573_s17, %s28_s26  }
  0x42   : > { %p1741_p5 = por %p1941_p3, %p35_p13  ;;  %p37_p9 = por %p36_p10, %p35_p13 }
  0x43   : > { %s183_s20 = sand.u32 1, %s1573_s17   ;;  %s1200_s28 = sshll.u32 %s1577_s18, 7 }
  0x44   : > { %s1942_s13 = scalar_select %p1741_p5, 1, 0 }
  0x45   : > { %s1199_s24 = sshll.u32 %s183_s20, 3  ;;  %s1754_s27 = scalar_lea.hbm %s1929_s0, %s1200_s28 }
  0x46   : > { %s187_s29 = scalar_lea.vmem [#allocation2], %s1199_s24  ;;  %p1758_p11 = pnand %p1354_p7, %p37_p9 }
  0x47   : > { %s194_s30 = sshll.u32 %s187_s29, 4  ;;  %s184_s6 = scalar_lea.sflag [#allocation3], %s183_s20  ;;  %s1756_s30 = int_to_ptr.vmem [resolvable:$true] %s194_s30 }
  0x48   : > { %s1477_s25 = scalar_lea.hbm %s1754_s27, 128  ;;  %p1479_p0 = pneg %p1758_p11 }
  0x49   : > { %p1478_p12 = scmp.ne.s32.totalorder %s1754_s27, %s1477_s25  ;;  %s1482_s26 = scalar_lea.hbm %s1929_s0, 256 }
  0x4a   : > { %p1483_p13 = scmp.lt.u32.totalorder %s1754_s27, %s1929_s0  ;;  %p1484_p6 = scmp.lt.u32.totalorder %s1482_s26, %s1477_s25 }
  0x4b   : > { %p1480_p2 = pnand %p1479_p0, %p1478_p12  ;;  %p1486_p3 = scmp.lt.u32.totalorder %s1477_s25, %s1754_s27 }
  0x4c   : > { %p1485_p10 = por %p1484_p6, %p1483_p13 }
  0x4d   : > { %p1481_p1 = pneg %p1480_p2 }
  0x4e   : > { %p1487_p7 = por %p1486_p3, %p1485_p10 }
  0x50   : > { %p1488_p9 = pnand %p1487_p7, %p1481_p1 }
  0x52   : > { %1491 = shalt.err (!%p1488_p9)
}
  0x53   : > { %s1492_s20 = scalar_lea.vmem %s1756_s30, 128  ;;  %s1583_s28 = smov [#allocation2]  }
  0x54   : > { %p1493_p12 = scmp.ne.s32.totalorder %s1756_s30, %s1492_s20  ;;  %s1497_s11 = sshll.u32 %s1583_s28, 4  ;;  %s1498_s11 = int_to_ptr.vmem [resolvable:$false] %s1497_s11 }
  0x55   : > { %s1499_s12 = scalar_lea.vmem %s1498_s11, 256  ;;  %p1500_p4 = scmp.lt.s32.totalorder %s1756_s30, %s1498_s11 }
  0x56   : > { %p1495_p2 = pnand %p1493_p12, %p1479_p0  ;;  %p1501_p13 = scmp.lt.s32.totalorder %s1499_s12, %s1492_s20 }
  0x58   : > { %p1496_p5 = pneg %p1495_p2  ;;  %p1502_p6 = por %p1501_p13, %p1500_p4 }
  0x5a   : > { %p1503_p10 = pnand %p1502_p6, %p1496_p5 }
  0x5c   : > { %1506 = shalt.err (!%p1503_p10)
}
  0x5d   : > { %1347 = dma.hbm_to_vmem [thread:$0]  (!%p1758_p11), %s1754_s27, 128, %s1756_s30, %s184_s6  }
  0x5e   : > { %203 = sbr.rel (%p1661_p8) target bundleno = 1650 (0x672), region = 36  ;;  %s1790_s29 = sand.u32 (!%p1661_p8), 1, %s1569_s16  }
  0x5f   : > { %s1202_s25 = sshll.u32 (!%p1661_p8), %s1790_s29, 3  ;;  %s206_s7 = scalar_lea.sflag (!%p1661_p8), [#allocation3], %s1790_s29 }
  0x60   : > { %s209_s8 = scalar_lea.vmem (!%p1661_p8), [#allocation2], %s1202_s25  ;;  %p1944_p4 = scmp.ne.s32.totalorder (!%p1661_p8), %s1937_s21, 0 }
  0x65   : > { %1552 = dma.done.wait (%p1944_p4), %s206_s7, 128  }
  0x66   : > { %1554 = vsyncadd (%p1944_p4), %s206_s7, 4294967168  ;;  %p1945_p5 = scmp.eq.s32.totalorder %s1642_s19, 0 }
  0x68   : > { %1556 = dma.done.wait (%p1945_p5), [#allocation6], 1024   ;;  %p1946_p8 = pmov %p1945_p5 }
  0x69   : > { %v1584_v0 = vmov 0.0|0.0   ;;  %vm1585_vm0 = vmmov 0   ;;  %v1586_v1 = vmov 0.0   ;;  %v243_v2 = vld [vmem:[#allocation5] sm:$0xff]  ;;  %v244_v3 = vld [vmem:[#allocation5 + $0x8] sm:$0xff]  ;;  %v245_v4 = vld [vmem:[#allocation5 + $0x10] sm:$0xff] }
  0x6a   : > { %1558 = vsyncadd (%p1946_p8), [#allocation6], 4294966272  ;;  %1313 = vmatprep.subr.bf16.mxu0 %v1584_v0  ;;  %1259 = vmatprep.mubr.msk.f32.mxu0 %vm1585_vm0, %v1586_v1  ;;  %v1314_v5 = vpack.c.bf16 %v244_v3, %v243_v2  ;;  %v246_v6 = vld [vmem:[#allocation5 + $0x18] sm:$0xff]  ;;  %vm247_vm1 = vcmask 261120   ;;  %s1587_s21 = smov 104   ;;  %s1588_s23 = smov 120  }
  0x6b   : > { %1262 = vmatprep.subr.mxu1 %v1586_v1  ;;  %1264 = vmatprep.mubr.msk.f32.mxu1 %vm1585_vm0, %v1586_v1  ;;  %v1317_v7 = vpack.c.bf16 %v246_v6, %v245_v4  ;;  %v242_v8 = vld [vmem:[%s209_s8] sm:$0xff]  ;;  %s1589_s27 = smov 96   ;;  %s1590_s30 = smov 112   ;;  %vm338_vm2 = vcmask 64512   ;;  %vm1002_vm3 = vcmask 130048   ;;  %vm1004_vm4 = vcmask 195584  }
  0x6c   : > { %1315 = vmatpush3.bf16.msra.mxu0 %v1314_v5  ;;  %s1591_s5 = smov 64   ;;  %s1592_s6 = smov 8  }
  0x6d   : > { %1316 = vmatprep.subr.bf16.mxu0 %v1584_v0  ;;  %s1593_s26 = smov 16   ;;  %s1594_s10 = smov 24  }
  0x6e   : > { %s1222_s28 = sshll.u32 %s1642_s19, 7  ;;  %s241_s11 = scalar_lea.vmem [#allocation8], %s1202_s25 }
  0x6f   : > { %s1105_s12 = sshll.u32 %s241_s11, 4  ;;  %p1947_p0 = scmp.ne.s32.totalorder %s1942_s13, 0  ;;  %s1886_s12 = int_to_ptr.vmem [resolvable:$true] %s1105_s12 }
  0x70   : > { %1318 = vmatpush3.bf16.msra.mxu0 %v1317_v7  ;;  %s1507_s19 = scalar_lea.vmem %s1886_s12, 128  ;;  %s1595_s25 = smov [#allocation8]  }
  0x71   : > { %1282 = vmatprep.subr.mxu0 %v1586_v1  ;;  %p1508_p11 = scmp.ne.s32.totalorder %s1886_s12, %s1507_s19 }
  0x73   : > { %1260 = vmatmul.mubr.msk.f32.vlgmr.msra.gmra.mrb[0].mxu0 %vm247_vm1, %v242_v8  ;;  %p1509_p1 = pnand %p1508_p11, %p1947_p0 }
  0x74   : > { %1284 = vmatprep.mubr.msk.f32.mxu0 %vm1585_vm0, %v1586_v1 }
  0x75   : > { %p1510_p3 = pneg %p1509_p1 }
 0x146   : > { %v317_v9 = vpop.f32.mrb[0].mxu0 }
 0x147   : > { %334 = vrot.lane.b32.xlu1 %v317_v9, %s1587_s21  ;;  %330 = vrot.lane.b32.xlu0 %v317_v9, %s1588_s23  ;;  %v1261_v10 = vpop.f32.mrb[1].mxu0  ;;  %v321_v11 = vmul.f32 0.35355338, %v317_v9 }
 0x148   : > { %v1006_v10 = vld [vmem:[#allocation7] sm:$0xff] }
 0x14b   : > { %336 = vrot.lane.b32.xlu1 %v317_v9, %s1589_s27  ;;  %332 = vrot.lane.b32.xlu0 %v317_v9, %s1590_s30 }
 0x14f   : > { %323 = vrot.lane.b32.xlu1 %v321_v11, %s1588_s23  ;;  %s1092_s23 = scalar_lea.sflag [#allocation4], %s1790_s29 }
 0x153   : > { %325 = vrot.lane.b32.xlu1 %v321_v11, %s1590_s30 }
 0x157   : > { %327 = vrot.lane.b32.xlu1 %v321_v11, %s1587_s21  ;;  %s1884_s21 = scalar_lea.hbm %s1933_s4, %s1222_s28 }
 0x1b9   : > { %v1815_v12 = vpop.permute.xlu1 %334  ;;  %v1817_v13 = vpop.permute.xlu0 %330 }
 0x1ba   : > { %413 = vrot.lane.b32.xlu0 %v1817_v13, %s1589_s27 }
 0x1bd   : > { %v337_v14 = vpop.permute.xlu1 %336  ;;  %v1820_v15 = vpop.permute.xlu0 %332 }
 0x1be   : > { %1263 = vmatpush3.xpose.msk.msra.mxu1 %vm338_vm2, %v337_v14  ;;  %489 = vrot.lane.b32.xlu0 %v1820_v15, %s1589_s27  ;;  %v1009_v14 = vld [vmem:[#allocation7 + $0x18] sm:$0xff] }
 0x1bf   : > { %1267 = vmatprep.subr.mxu1 %v1586_v1 }
 0x1c1   : > { %1265 = vmatmul.mubr.msk.f32.vlgmr.msra.gmra.mrb[0].mxu1 %vm338_vm2, %v321_v11  ;;  %v324_v16 = vpop.permute.xlu1 %323  ;;  %v1007_v11 = vld [vmem:[#allocation7 + $0x8] sm:$0xff] }
 0x1c2   : > { %565 = vrot.lane.b32.xlu0 %v1815_v12, %s1589_s27  ;;  %1269 = vmatprep.mubr.msk.f32.mxu1 %vm1585_vm0, %v1586_v1  ;;  %s1511_s27 = sshll.u32 %s1595_s25, 4  ;;  %s1512_s27 = int_to_ptr.vmem [resolvable:$false] %s1511_s27 }
 0x1c3   : > { %s1513_s30 = scalar_lea.vmem %s1512_s27, 256  ;;  %p1514_p7 = scmp.lt.s32.totalorder %s1886_s12, %s1512_s27 }
 0x1c4   : > { %p1515_p9 = scmp.lt.s32.totalorder %s1513_s30, %s1507_s19 }
 0x1c5   : > { %v326_v19 = vpop.permute.xlu1 %325 }
 0x1c6   : > { %p1516_p12 = por %p1515_p9, %p1514_p7 }
 0x1c8   : > { %p1517_p2 = pnand %p1516_p12, %p1510_p3 }
 0x1c9   : > { %v328_v21 = vpop.permute.xlu1 %327 }
 0x22c   : > { %v414_v17 = vpop.permute.xlu0 %413 }
 0x22d   : > { %1268 = vmatpush3.xpose.msk.msra.mxu1 %vm338_vm2, %v414_v17 }
 0x22e   : > { %1272 = vmatprep.subr.mxu1 %v1586_v1 }
 0x230   : > { %v490_v18 = vpop.permute.xlu0 %489  ;;  %1270 = vmatmul.mubr.msk.f32.vlgmr.msra.gmra.mrb[2].mxu1 %vm338_vm2, %v324_v16 }
 0x231   : > { %1273 = vmatpush3.xpose.msk.msra.mxu1 %vm338_vm2, %v490_v18  ;;  %1274 = vmatprep.mubr.msk.f32.mxu1 %vm1585_vm0, %v1586_v1 }
 0x232   : > { %1277 = vmatprep.subr.mxu1 %v1586_v1 }
 0x234   : > { %v566_v20 = vpop.permute.xlu0 %565  ;;  %1275 = vmatmul.mubr.msk.f32.vlgmr.msra.gmra.mrb[4].mxu1 %vm338_vm2, %v326_v19 }
 0x235   : > { %1278 = vmatpush3.xpose.msk.msra.mxu1 %vm338_vm2, %v566_v20  ;;  %1279 = vmatprep.mubr.msk.f32.mxu1 %vm1585_vm0, %v1586_v1 }
 0x236   : > { %1287 = vmatprep.subr.mxu1 %v1586_v1 }
 0x238   : > { %1280 = vmatmul.mubr.msk.f32.vlgmr.msra.gmra.mrb[6].mxu1 %vm338_vm2, %v328_v21 }
 0x239   : > { %1289 = vmatprep.mubr.msk.f32.mxu1 %vm1585_vm0, %v1586_v1 }
 0x294   : > { %v409_v22 = vpop.f32.mrb[0].mxu1 }
 0x295   : > { %v1266_v23 = vpop.f32.mrb[1].mxu1  ;;  %v641_v24 = vsel %vm338_vm2, %v409_v22, -inf }
 0x296   : > { %642 = vmax.xlane.f32.xlu0 %v641_v24 }
 0x303   : > { %v485_v25 = vpop.f32.mrb[2].mxu1 }
 0x304   : > { %v1271_v26 = vpop.f32.mrb[3].mxu1  ;;  %v644_v27 = vsel %vm338_vm2, %v485_v25, -inf }
 0x305   : > { %645 = vmax.xlane.f32.xlu1 %v644_v27  ;;  %v1219_v26 = vld [vmem:[%s1932_s3] ss:$0 sm:$0xff] }
 0x307   : > { %v561_v28 = vpop.f32.mrb[4].mxu1 }
 0x308   : > { %v1276_v29 = vpop.f32.mrb[5].mxu1  ;;  %v647_v30 = vsel %vm338_vm2, %v561_v28, -inf }
 0x309   : > { %648 = vmax.xlane.f32.xlu0 %v647_v30 }
 0x30b   : > { %v637_v31 = vpop.f32.mrb[6].mxu1 }
 0x30c   : > { %v1281_v32 = vpop.f32.mrb[7].mxu1  ;;  %v650_v33 = vsel %vm338_vm2, %v637_v31, -inf }
 0x30d   : > { %651 = vmax.xlane.f32.xlu0 %v650_v33 }
 0x316   : > { %685 = vrot.lane.b32.xlu1 %v317_v9, %s1591_s5 }
 0x323   : > { %v643_v34 = vpop.xlane.xlu0 %642 }
 0x324   : > { %v653_v35 = vsub.f32 %v409_v22, %v643_v34 }
 0x326   : > { %v657_v36 = vmul.f32 1.442695, %v653_v35 }
 0x328   : > { %1405 = vpow2.f32 %v657_v36 }
 0x332   : > { %v1406_v37 = vpop.eup %1405 }
 0x333   : > { %v665_v38 = vsel %vm338_vm2, %v1406_v37, 0.0 }
 0x33a   : > { %666 = vadd.xlane.f32.xlu1 %v665_v38 }
 0x392   : > { %v646_v39 = vpop.xlane.xlu1 %645 }
 0x393   : > { %v654_v40 = vsub.f32 %v485_v25, %v646_v39 }
 0x395   : > { %v659_v41 = vmul.f32 1.442695, %v654_v40 }
 0x396   : > { %v686_v42 = vpop.permute.xlu1 %685  ;;  %v649_v43 = vpop.xlane.xlu0 %648 }
 0x397   : > { %1407 = vpow2.f32 %v659_v41  ;;  %v655_v44 = vsub.f32 %v561_v28, %v649_v43  ;;  %1283 = vmatpush3.msra.mxu0 %v686_v42 }
 0x398   : > { %1292 = vmatprep.subr.mxu0 %v1586_v1 }
 0x399   : > { %v661_v45 = vmul.f32 1.442695, %v655_v44 }
 0x39a   : > { %v652_v46 = vpop.xlane.xlu0 %651 }
 0x39b   : > { %1409 = vpow2.f32 %v661_v45  ;;  %v656_v47 = vsub.f32 %v637_v31, %v652_v46 }
 0x39d   : > { %v663_v48 = vmul.f32 1.442695, %v656_v47 }
 0x39f   : > { %1411 = vpow2.f32 %v663_v48 }
 0x3a1   : > { %v1408_v49 = vpop.eup %1407 }
 0x3a2   : > { %v668_v50 = vsel %vm338_vm2, %v1408_v49, 0.0 }
 0x3a3   : > { %669 = vadd.xlane.f32.xlu0 %v668_v50 }
 0x3a5   : > { %v1410_v51 = vpop.eup %1409 }
 0x3a6   : > { %v671_v52 = vsel %vm338_vm2, %v1410_v51, 0.0 }
 0x3a7   : > { %672 = vadd.xlane.f32.xlu1 %v671_v52 }
 0x3a9   : > { %v1412_v53 = vpop.eup %1411 }
 0x3aa   : > { %v674_v54 = vsel %vm338_vm2, %v1412_v53, 0.0 }
 0x3ab   : > { %675 = vadd.xlane.f32.xlu0 %v674_v54 }
 0x3b8   : > { %837 = vrot.lane.b32.xlu1 %v1820_v15, %s1591_s5 }
 0x3bc   : > { %913 = vrot.lane.b32.xlu1 %v1815_v12, %s1591_s5  ;;  %v1320_v12 = vpack.c.bf16 %v1007_v11, %v1006_v10 }
 0x3c1   : > { %761 = vrot.lane.b32.xlu0 %v1817_v13, %s1591_s5  ;;  %v1008_v13 = vld [vmem:[#allocation7 + $0x10] sm:$0xff] }
 0x3c2   : > { %v1323_v15 = vpack.c.bf16 %v1009_v14, %v1008_v13 }
 0x3c7   : > { %v667_v55 = vpop.xlane.xlu1 %666 }
 0x3c8   : > { %1413 = vrcp.f32 %v667_v55 }
 0x3d2   : > { %v1414_v56 = vpop.eup %1413 }
 0x3d3   : > { %v678_v57 = vmul.f32 %v1414_v56, %v1406_v37 }
 0x3d5   : > { %1285 = vmatmul.mubr.msk.f32.vlgmr.msra.gmra.mrb[2].mxu0 %vm338_vm2, %v678_v57 }
 0x3d6   : > { %1294 = vmatprep.mubr.msk.f32.mxu0 %vm1585_vm0, %v1586_v1 }
 0x430   : > { %v670_v58 = vpop.xlane.xlu0 %669 }
 0x431   : > { %1415 = vrcp.f32 %v670_v58 }
 0x434   : > { %v673_v59 = vpop.xlane.xlu1 %672 }
 0x435   : > { %1417 = vrcp.f32 %v673_v59 }
 0x438   : > { %v838_v60 = vpop.permute.xlu1 %837  ;;  %v676_v61 = vpop.xlane.xlu0 %675 }
 0x439   : > { %1419 = vrcp.f32 %v676_v61  ;;  %1293 = vmatpush3.msra.mxu0 %v838_v60 }
 0x43a   : > { %1319 = vmatprep.subr.bf16.mxu0 %v1584_v0 }
 0x43b   : > { %v1416_v62 = vpop.eup %1415 }
 0x43c   : > { %v680_v63 = vmul.f32 %v1416_v62, %v1408_v49  ;;  %v762_v2 = vpop.permute.xlu0 %761  ;;  %v914_v3 = vpop.permute.xlu1 %913 }
 0x43d   : > { %1288 = vmatpush3.msra.mxu1 %v762_v2 }
 0x43e   : > { %1290 = vmatmul.mubr.msk.f32.vlgmr.msra.gmra.mrb[8].mxu1 %vm338_vm2, %v680_v63  ;;  %1297 = vmatprep.subr.mxu1 %v1586_v1 }
 0x43f   : > { %v1418_v4 = vpop.eup %1417  ;;  %1298 = vmatpush3.msra.mxu1 %v914_v3  ;;  %1299 = vmatprep.mubr.msk.f32.mxu1 %vm1585_vm0, %v1586_v1 }
 0x440   : > { %v682_v5 = vmul.f32 %v1418_v4, %v1410_v51 }
 0x442   : > { %1295 = vmatmul.mubr.msk.f32.vlgmr.msra.gmra.mrb[4].mxu0 %vm338_vm2, %v682_v5 }
 0x443   : > { %v1420_v6 = vpop.eup %1419  ;;  %1310 = vmatprep.mubr.msk.f32.mxu0 %vm1585_vm0, %v1586_v1  ;;  %1321 = vmatpush3.bf16.msra.mxu0 %v1320_v12 }
 0x444   : > { %v684_v7 = vmul.f32 %v1420_v6, %v1412_v53  ;;  %1322 = vmatprep.subr.bf16.mxu0 %v1584_v0 }
 0x446   : > { %1300 = vmatmul.mubr.msk.f32.vlgmr.msra.gmra.mrb[10].mxu1 %vm338_vm2, %v684_v7 }
 0x447   : > { %1324 = vmatpush3.bf16.msra.mxu0 %v1323_v15 }
 0x4a8   : > { %v757_v8 = vpop.f32.mrb[2].mxu0 }
 0x4a9   : > { %v1286_v9 = vpop.f32.mrb[3].mxu0 }
 0x511   : > { %v833_v16 = vpop.f32.mrb[8].mxu1 }
 0x512   : > { %990 = vrot.lane.b32.xlu0 %v833_v16, %s1592_s6  ;;  %v1291_v17 = vpop.f32.mrb[9].mxu1 }
 0x515   : > { %v909_v1 = vpop.f32.mrb[4].mxu0 }
 0x516   : > { %994 = vrot.lane.b32.xlu1 %v909_v1, %s1593_s26  ;;  %v1296_v18 = vpop.f32.mrb[5].mxu0 }
 0x519   : > { %v985_v19 = vpop.f32.mrb[10].mxu1 }
 0x51a   : > { %998 = vrot.lane.b32.xlu0 %v985_v19, %s1594_s10  ;;  %v1301_v20 = vpop.f32.mrb[11].mxu1 }
 0x584   : > { %v991_v21 = vpop.permute.xlu0 %990 }
 0x585   : > { %v1001_v22 = vsel %vm338_vm2, %v757_v8, %v991_v21 }
 0x588   : > { %v995_v0 = vpop.permute.xlu1 %994 }
 0x589   : > { %v1003_v23 = vsel %vm1002_vm3, %v1001_v22, %v995_v0 }
 0x58c   : > { %v999_v24 = vpop.permute.xlu0 %998 }
 0x58d   : > { %v1005_v25 = vsel %vm1004_vm4, %v1003_v23, %v999_v24 }
 0x58e   : > { %1311 = vmatmul.mubr.msk.f32.vlgmr.msra.gmra.mrb[6].mxu0 %vm247_vm1, %v1005_v25 }
 0x661   : > { %v1086_v27 = vpop.f32.mrb[6].mxu0 }
 0x662   : > { %v1087_v28 = vadd.f32 %v1219_v26, %v1086_v27  ;;  %v1312_v29 = vpop.f32.mrb[7].mxu0 }
 0x664   : > { %1090 = vst.msk [vmem:[%s241_s11] sm:$0xff] %vm247_vm1, %v1087_v28 }
 0x665   : > { %1520 = shalt.err (!%p1517_p2)
}
 0x666   : > { %s1521_s29 = scalar_lea.hbm %s1884_s21, 128  ;;  %s1525_s26 = scalar_lea.hbm %s1933_s4, 256 }
 0x667   : > { %p1522_p13 = scmp.ne.s32.totalorder %s1884_s21, %s1521_s29  ;;  %p1526_p4 = scmp.lt.u32.totalorder %s1884_s21, %s1933_s4 }
 0x668   : > { %p1527_p5 = scmp.lt.u32.totalorder %s1525_s26, %s1521_s29  ;;  %p1529_p11 = scmp.lt.u32.totalorder %s1521_s29, %s1884_s21 }
 0x669   : > { %p1523_p6 = pnand %p1522_p13, %p1947_p0 }
 0x66a   : > { %p1528_p8 = por %p1527_p5, %p1526_p4 }
 0x66b   : > { %p1524_p10 = pneg %p1523_p6 }
 0x66c   : > { %p1530_p1 = por %p1529_p11, %p1528_p8 }
 0x66e   : > { %p1531_p3 = pnand %p1530_p1, %p1524_p10 }
 0x670   : > { %1534 = shalt.err (!%p1531_p3)
}
 0x671   : > { %1335 = dma.vmem_to_hbm [thread:$0]  (%p1947_p0), %s1886_s12, 128, %s1884_s21, %s1092_s23  }
 0x672 PF: > { %s1117_s20 = sand.u32 1, %s1565_s15   ;;  %p1948_p7 = scmp.ne.s32.totalorder %s1938_s22, 0 }
 0x673   : > { %p1949_p9 = scmp.ge.s32.totalorder %s1577_s18, 2  ;;  %s1118_s28 = scalar_lea.sflag [#allocation4], %s1117_s20 }
 0x675   : > { %p1349_p12 = pnand %p1949_p9, %p1948_p7 }
 0x677   : > { %1560 = dma.done.wait (!%p1349_p12), %s1118_s28, 128  }
 0x678   : > { %1562 = vsyncadd (!%p1349_p12), %s1118_s28, 4294967168  ;;  %p18_p2 = scmp.ge.s32.totalorder %s1731_s9, 4   ;;  %s1950_s15 = smov %s1569_s16 }
 0x679   : > { %s1951_s16 = smov %s1573_s17  ;;  %s1952_s17 = smov %s1747_s14 }
 0x67a   : > { %s1953_s18 = smov %s1731_s9  ;;  %20 = sbr.rel (!%p18_p2) target bundleno = 6 (0x6), region = 89 }
 0x681   :  { %1123 = vsyncpa [#allocation3], 1 }
 0x682   :  { %1125 = vsyncpa [#allocation3 + $0x1], 1 }
 0x683   :  { %1126 = vsyncpa [#allocation6], 1 }
 0x684   :  { %1127 = vsyncpa [#allocation4], 1 }
 0x685   :  { %1129 = vsyncpa [#allocation4 + $0x1], 1 }

</bundles_post_ra>
